<compile_context>
chip_gen: v7x
topology: tpu7x:2x2x1
jax: 0.10.0
libtpu: 0.0.40
codegen_flags: <defaults>
</compile_context>

<pallas_src>
import functools

import jax
import jax.numpy as jnp
from jax.experimental import pallas as pl
from jax.experimental.pallas import tpu as pltpu


def _round_up(x, m):
    return ((x + m - 1) // m) * m


# ---------------------------------------------------------------------------
# Optional single-buffering of VMEM-resident (constant index_map) blocks.
# Guarded so older Pallas APIs without pipeline_mode still work.
try:
    pl.BlockSpec((8, 128), lambda i: (0, 0), pipeline_mode=pl.Buffered(1))
    _HAS_BUFFERED = True
except Exception:  # pragma: no cover - API not available
    _HAS_BUFFERED = False


def _const_spec(shape, index_map):
    """BlockSpec for a block that is identical for every grid step."""
    if _HAS_BUFFERED:
        return pl.BlockSpec(shape, index_map, pipeline_mode=pl.Buffered(1))
    return pl.BlockSpec(shape, index_map)


def _vmem_budget_bytes():
    """Per-core VMEM budget with headroom (v5e/v6e: 128 MiB, v7x: 64 MiB)."""
    cap = 64 << 20  # conservative default (v7x-sized)
    try:
        info = pltpu.get_tpu_info()
        cap = int(getattr(info, "vmem_capacity_bytes", cap) or cap)
    except Exception:
        pass
    return max(32 << 20, int(cap * 0.85))


def _batch_tile(B):
    """Batch tile: >=16 rows (bf16 sublane packing), big tiles to amortize the
    ~0.35us/grid-step overhead, but keep >=2 tiles when possible so v7x's two
    TensorCores both get work on the "parallel" axis."""
    b16 = _round_up(B, 16)
    tm = min(512, b16)
    if tm == b16 and b16 >= 32 and (b16 // 2) % 16 == 0:
        tm = b16 // 2
    return tm


# ---------------------------------------------------------------------------
# Kernels
def _mlp_kernel_resident(x_ref, w1_ref, b1_ref, w2_ref, b2_ref, w3_ref, b3_ref,
                         o_ref):
    """One (TM, in_dim) f32 batch tile through all three layers.
    Weights are VMEM-resident bf16; accumulation / epilogue in f32."""
    x = x_ref[...].astype(jnp.bfloat16)                       # f32 -> bf16 on VPU

    h1 = jnp.dot(x, w1_ref[...], preferred_element_type=jnp.float32) + b1_ref[...]
    h1 = jnp.maximum(h1, 0.0)

    h2 = jnp.dot(h1.astype(jnp.bfloat16), w2_ref[...],
                 preferred_element_type=jnp.float32) + b2_ref[...]
    h2 = jnp.maximum(h2, 0.0)

    out = jnp.dot(h2.astype(jnp.bfloat16), w3_ref[...],
                  preferred_element_type=jnp.float32) + b3_ref[...]
    o_ref[...] = out.astype(o_ref.dtype)


def _mlp_kernel_ktiled(x_ref, w1_ref, b1_ref, w2_ref, b2_ref, w3_ref, b3_ref,
                       o_ref, acc_ref):
    """Fallback for large in_dim: fc1 contraction tiled over K (grid axis 1)
    into an f32 accumulator; fc2/fc3 run on the last K step."""
    k = pl.program_id(1)

    @pl.when(k == 0)
    def _():
        acc_ref[...] = jnp.zeros_like(acc_ref)

    acc_ref[...] += jnp.dot(x_ref[...].astype(jnp.bfloat16), w1_ref[...],
                            preferred_element_type=jnp.float32)

    @pl.when(k == pl.num_programs(1) - 1)
    def _():
        h1 = jnp.maximum(acc_ref[...] + b1_ref[...], 0.0)
        h2 = jnp.dot(h1.astype(jnp.bfloat16), w2_ref[...],
                     preferred_element_type=jnp.float32) + b2_ref[...]
        h2 = jnp.maximum(h2, 0.0)
        out = jnp.dot(h2.astype(jnp.bfloat16), w3_ref[...],
                      preferred_element_type=jnp.float32) + b3_ref[...]
        o_ref[...] = out.astype(o_ref.dtype)


# ---------------------------------------------------------------------------
# pallas_call builders
def _mlp_resident_call(x, w1, b1, w2, b2, w3, b3, *, TM, vmem_budget,
                       weight_buffers):
    B_pad, in_dim = x.shape
    h1p, h2p, n_pad = w1.shape[1], w2.shape[1], w3.shape[1]
    grid = (B_pad // TM,)

    block_bytes = (
        2 * TM * in_dim * 4                                    # x tile (f32, 2 bufs)
        + 2 * TM * n_pad * 4                                   # out tile (f32, 2 bufs)
        + weight_buffers * ((in_dim * h1p + h1p * h2p + h2p * n_pad) * 2
                            + 8 * (h1p + h2p + n_pad) * 4)     # resident weights/biases
        + TM * (h1p + h2p) * 4                                 # intermediates
    )
    vmem_limit = int(min(max(8 << 20, int(block_bytes * 1.25)), vmem_budget))

    cost = pl.CostEstimate(
        flops=2 * B_pad * (in_dim * h1p + h1p * h2p + h2p * n_pad),
        transcendentals=0,
        bytes_accessed=(x.size * 4 + (w1.size + w2.size + w3.size) * 2
                        + (b1.size + b2.size + b3.size) * 4 + B_pad * n_pad * 4),
    )

    return pl.pallas_call(
        _mlp_kernel_resident,
        # TODO(synk): output dtype could be bf16 to halve writeback bytes if
        # downstream consumers accept it; kept f32 to match nn.Linear output.
        out_shape=jax.ShapeDtypeStruct((B_pad, n_pad), jnp.float32),
        grid=grid,
        in_specs=[
            pl.BlockSpec((TM, in_dim), lambda i: (i, 0)),      # x: batch-tiled, f32
            _const_spec((in_dim, h1p), lambda i: (0, 0)),      # weights/biases:
            _const_spec((1, h1p),      lambda i: (0, 0)),      # constant index_map
            _const_spec((h1p, h2p),    lambda i: (0, 0)),      # -> DMA'd once,
            _const_spec((1, h2p),      lambda i: (0, 0)),      #    VMEM-resident
            _const_spec((h2p, n_pad),  lambda i: (0, 0)),
            _const_spec((1, n_pad),    lambda i: (0, 0)),
        ],
        out_specs=pl.BlockSpec((TM, n_pad), lambda i: (i, 0)),
        compiler_params=pltpu.CompilerParams(
            dimension_semantics=("parallel",),
            vmem_limit_bytes=vmem_limit,
        ),
        cost_estimate=cost,
    )(x, w1, b1, w2, b2, w3, b3)


def _mlp_ktiled_call(x, w1, b1, w2, b2, w3, b3, *, TM, vmem_budget,
                     weight_buffers, TK=512):
    B_pad = x.shape[0]
    in_dim = w1.shape[0]
    h1p, h2p, n_pad = w1.shape[1], w2.shape[1], w3.shape[1]

    K_pad = _round_up(in_dim, TK)
    if K_pad != in_dim:
        x = jnp.pad(x, ((0, 0), (0, K_pad - in_dim)))
        w1 = jnp.pad(w1, ((0, K_pad - in_dim), (0, 0)))
    grid = (B_pad // TM, K_pad // TK)

    block_bytes = (
        2 * TM * TK * 4                                        # x K-tile (f32, 2 bufs)
        + 2 * TK * h1p * 2                                     # w1 K-tile (bf16, 2 bufs)
        + 2 * TM * n_pad * 4                                   # out tile
        + weight_buffers * ((h1p * h2p + h2p * n_pad) * 2
                            + 8 * (h1p + h2p + n_pad) * 4)     # resident fc2/fc3
        + TM * (h1p + h2p) * 4                                 # acc scratch + h2
    )
    vmem_limit = int(min(max(8 << 20, int(block_bytes * 1.25)), vmem_budget))

    cost = pl.CostEstimate(
        flops=2 * B_pad * (K_pad * h1p + h1p * h2p + h2p * n_pad),
        transcendentals=0,
        bytes_accessed=(x.size * 4 + (w1.size + w2.size + w3.size) * 2
                        + (b1.size + b2.size + b3.size) * 4 + B_pad * n_pad * 4),
    )

    return pl.pallas_call(
        _mlp_kernel_ktiled,
        out_shape=jax.ShapeDtypeStruct((B_pad, n_pad), jnp.float32),
        grid=grid,
        in_specs=[
            pl.BlockSpec((TM, TK),  lambda i, k: (i, k)),      # x: batch x K tiled
            pl.BlockSpec((TK, h1p), lambda i, k: (k, 0)),      # w1: K tiled
            _const_spec((1, h1p),     lambda i, k: (0, 0)),
            _const_spec((h1p, h2p),   lambda i, k: (0, 0)),
            _const_spec((1, h2p),     lambda i, k: (0, 0)),
            _const_spec((h2p, n_pad), lambda i, k: (0, 0)),
            _const_spec((1, n_pad),   lambda i, k: (0, 0)),
        ],
        out_specs=pl.BlockSpec((TM, n_pad), lambda i, k: (i, 0)),
        scratch_shapes=[pltpu.VMEM((TM, h1p), jnp.float32)],   # fc1 accumulator
        compiler_params=pltpu.CompilerParams(
            dimension_semantics=("parallel", "arbitrary"),
            vmem_limit_bytes=vmem_limit,
        ),
        cost_estimate=cost,
    )(x, w1, b1, w2, b2, w3, b3)


# ---------------------------------------------------------------------------
# Parameter preparation (one-time) and forward pass (per-call)
def prepare_params(w1, b1, w2, b2, w3, b3):
    """One-time: cast weights to bf16 MXU operands and zero-pad every hidden /
    output feature dim to a lane-dense multiple of 128.  Padding is exact:
    ReLU(0 + 0) = 0 and zero rows/columns contribute nothing."""
    in_dim, h1 = w1.shape
    h2 = w2.shape[1]
    num_classes = w3.shape[1]
    h1p = _round_up(h1, 128)
    h2p = _round_up(h2, 128)
    np_ = _round_up(num_classes, 128)

    def pad2(a, rows, cols):
        return jnp.pad(a, ((0, rows - a.shape[0]), (0, cols - a.shape[1])))

    return dict(
        w1=pad2(w1.astype(jnp.bfloat16), in_dim, h1p),
        b1=pad2(b1.astype(jnp.float32).reshape(1, h1), 1, h1p),
        w2=pad2(w2.astype(jnp.bfloat16), h1p, h2p),
        b2=pad2(b2.astype(jnp.float32).reshape(1, h2), 1, h2p),
        w3=pad2(w3.astype(jnp.bfloat16), h2p, np_),
        b3=pad2(b3.astype(jnp.float32).reshape(1, num_classes), 1, np_),
    )


@functools.partial(jax.jit, static_argnames=("num_classes", "force_ktiled"))
def mlp_forward(x_nchw, params, *, num_classes, force_ktiled=False):
    """x_nchw: (B, C, H, W) float32.  params: from prepare_params().
    Returns logits (B, num_classes) float32."""
    w1, b1 = params["w1"], params["b1"]
    w2, b2 = params["w2"], params["b2"]
    w3, b3 = params["w3"], params["b3"]

    B = x_nchw.shape[0]
    x_flat = x_nchw.reshape(B, -1).astype(jnp.float32)         # nn.Flatten (NCHW)
    in_dim = x_flat.shape[1]
    assert in_dim == w1.shape[0], "input feature dim mismatch"

    TM = _batch_tile(B)
    B_pad = _round_up(B, TM)
    if B_pad != B:                                             # pad only the remainder
        x_flat = jnp.pad(x_flat, ((0, B_pad - B), (0, 0)))

    vmem_budget = _vmem_budget_bytes()
    weight_buffers = 1 if _HAS_BUFFERED else 2                 # Mosaic buffer count
    weight_bytes = (w1.size + w2.size + w3.size) * 2 * weight_buffers
    resident_ok = weight_bytes <= min(48 << 20, vmem_budget // 2)

    if resident_ok and not force_ktiled:
        out_pad = _mlp_resident_call(x_flat, w1, b1, w2, b2, w3, b3,
                                     TM=TM, vmem_budget=vmem_budget,
                                     weight_buffers=weight_buffers)
    else:
        out_pad = _mlp_ktiled_call(x_flat, w1, b1, w2, b2, w3, b3,
                                   TM=TM, vmem_budget=vmem_budget,
                                   weight_buffers=weight_buffers)

    # Strip batch and lane padding.
    return out_pad[:B, :num_classes]


def init_linear_params(key, fan_in, fan_out):
    """Deterministic init mimicking nn.Linear: U(-1/sqrt(fan_in), 1/sqrt(fan_in)).
    Weight returned as (in, out) so the kernel computes x @ W + b."""
    kw, kb = jax.random.split(key)
    bound = 1.0 / jnp.sqrt(jnp.float32(fan_in))
    w = jax.random.uniform(kw, (fan_in, fan_out), jnp.float32, -bound, bound)
    b = jax.random.uniform(kb, (1, fan_out), jnp.float32, -bound, bound)
    return w, b


if __name__ == "__main__":
    # Small shapes consistent with the module: image (B, 3, 16, 16) -> input_size = 768.
    B, C, H, W = 2, 3, 16, 16
    input_size = C * H * W
    hidden = [128, 64]
    num_classes = 3

    key = jax.random.PRNGKey(0)
    kx, k1, k2, k3 = jax.random.split(key, 4)

    x = jax.random.normal(kx, (B, C, H, W), jnp.float32)
    w1, b1 = init_linear_params(k1, input_size, hidden[0])
    w2, b2 = init_linear_params(k2, hidden[0], hidden[1])
    w3, b3 = init_linear_params(k3, hidden[1], num_classes)

    params = prepare_params(w1, b1, w2, b2, w3, b3)            # one-time cast/pad

    out = mlp_forward(x, params, num_classes=num_classes)
    out = jax.block_until_ready(out)
    assert out.shape == (B, num_classes)

    # Reference 1: same bf16-operand / f32-accumulate recipe (tight check).
    xf = x.reshape(B, -1)
    hb = jnp.maximum(jnp.dot(xf.astype(jnp.bfloat16), w1.astype(jnp.bfloat16),
                             preferred_element_type=jnp.float32) + b1, 0.0)
    hb = jnp.maximum(jnp.dot(hb.astype(jnp.bfloat16), w2.astype(jnp.bfloat16),
                             preferred_element_type=jnp.float32) + b2, 0.0)
    ref_bf16 = jnp.dot(hb.astype(jnp.bfloat16), w3.astype(jnp.bfloat16),
                       preferred_element_type=jnp.float32) + b3
    assert jnp.allclose(out, ref_bf16, atol=2e-3, rtol=2e-3), "mismatch vs bf16 reference"

    # Reference 2: full f32 math (loose sanity check on bf16 quantization error).
    ref_f32 = jnp.maximum(xf @ w1 + b1, 0.0)
    ref_f32 = jnp.maximum(ref_f32 @ w2 + b2, 0.0)
    ref_f32 = ref_f32 @ w3 + b3
    assert jnp.allclose(out, ref_f32, atol=1e-1, rtol=1e-1), "mismatch vs f32 reference"

    # Also exercise the K-tiled fallback (used when weights don't fit VMEM-resident).
    out_kt = mlp_forward(x, params, num_classes=num_classes, force_ktiled=True)
    out_kt = jax.block_until_ready(out_kt)
    assert jnp.allclose(out_kt, ref_bf16, atol=2e-3, rtol=2e-3), "ktiled mismatch"

    print("KERNEL_OK")
</pallas_src>

<mosaic_0001>
module attributes {stable_mosaic.version = 11 : i64} {
  func.func @_mlp_kernel_resident(%arg0: i32, %arg1: memref<16x768xf32, #tpu.memory_space<vmem>>, %arg2: memref<768x128xbf16, #tpu.memory_space<vmem>>, %arg3: memref<1x128xf32, #tpu.memory_space<vmem>>, %arg4: memref<128x128xbf16, #tpu.memory_space<vmem>>, %arg5: memref<1x128xf32, #tpu.memory_space<vmem>>, %arg6: memref<128x128xbf16, #tpu.memory_space<vmem>>, %arg7: memref<1x128xf32, #tpu.memory_space<vmem>>, %arg8: memref<16x128xf32, #tpu.memory_space<vmem>>) attributes {dimension_semantics = [#tpu.dimension_semantics<parallel>], iteration_bounds = array<i64: 1>, scalar_prefetch = 0 : i64, scratch_operands = 0 : i64, tpu.core_type = #tpu.core_type<tc>, window_params = [{transform_indices = @transform_0, window_bounds = array<i64: 16, 768>}, {pipeline_mode = #tpu.pipeline_mode<synchronous>, transform_indices = @transform_1, window_bounds = array<i64: 768, 128>}, {pipeline_mode = #tpu.pipeline_mode<synchronous>, transform_indices = @transform_2, window_bounds = array<i64: 1, 128>}, {pipeline_mode = #tpu.pipeline_mode<synchronous>, transform_indices = @transform_3, window_bounds = array<i64: 128, 128>}, {pipeline_mode = #tpu.pipeline_mode<synchronous>, transform_indices = @transform_4, window_bounds = array<i64: 1, 128>}, {pipeline_mode = #tpu.pipeline_mode<synchronous>, transform_indices = @transform_5, window_bounds = array<i64: 128, 128>}, {pipeline_mode = #tpu.pipeline_mode<synchronous>, transform_indices = @transform_6, window_bounds = array<i64: 1, 128>}, {transform_indices = @transform_7, window_bounds = array<i64: 16, 128>}]} {
    %c0 = arith.constant 0 : index
    %c0_0 = arith.constant 0 : index
    %0 = vector.load %arg1[%c0, %c0_0] : memref<16x768xf32, #tpu.memory_space<vmem>>, vector<16x768xf32>
    %1 = arith.truncf %0 : vector<16x768xf32> to vector<16x768xbf16>
    %c0_1 = arith.constant 0 : index
    %c0_2 = arith.constant 0 : index
    %2 = vector.load %arg2[%c0_1, %c0_2] : memref<768x128xbf16, #tpu.memory_space<vmem>>, vector<768x128xbf16>
    %cst = arith.constant dense<0.000000e+00> : vector<16x128xf32>
    %3 = tpu.matmul %1, %2, %cst {dimension_numbers = #tpu.dot_dimension_numbers<[1], [0], [0], [1], [0, 0, 1, 1], [], []>} : vector<16x768xbf16>, vector<768x128xbf16>, vector<16x128xf32> -> vector<16x128xf32>
    %c0_3 = arith.constant 0 : index
    %c0_4 = arith.constant 0 : index
    %4 = vector.load %arg3[%c0_3, %c0_4] : memref<1x128xf32, #tpu.memory_space<vmem>>, vector<1x128xf32>
    %5 = vector.broadcast %4 : vector<1x128xf32> to vector<16x128xf32>
    %6 = arith.addf %3, %5 : vector<16x128xf32>
    %cst_5 = arith.constant 0.000000e+00 : f32
    %7 = vector.broadcast %cst_5 : f32 to vector<16x128xf32>
    %8 = arith.maximumf %6, %7 : vector<16x128xf32>
    %9 = arith.truncf %8 : vector<16x128xf32> to vector<16x128xbf16>
    %c0_6 = arith.constant 0 : index
    %c0_7 = arith.constant 0 : index
    %10 = vector.load %arg4[%c0_6, %c0_7] : memref<128x128xbf16, #tpu.memory_space<vmem>>, vector<128x128xbf16>
    %cst_8 = arith.constant dense<0.000000e+00> : vector<16x128xf32>
    %11 = tpu.matmul %9, %10, %cst_8 {dimension_numbers = #tpu.dot_dimension_numbers<[1], [0], [0], [1], [0, 0, 1, 1], [], []>} : vector<16x128xbf16>, vector<128x128xbf16>, vector<16x128xf32> -> vector<16x128xf32>
    %c0_9 = arith.constant 0 : index
    %c0_10 = arith.constant 0 : index
    %12 = vector.load %arg5[%c0_9, %c0_10] : memref<1x128xf32, #tpu.memory_space<vmem>>, vector<1x128xf32>
    %13 = vector.broadcast %12 : vector<1x128xf32> to vector<16x128xf32>
    %14 = arith.addf %11, %13 : vector<16x128xf32>
    %cst_11 = arith.constant 0.000000e+00 : f32
    %15 = vector.broadcast %cst_11 : f32 to vector<16x128xf32>
    %16 = arith.maximumf %14, %15 : vector<16x128xf32>
    %17 = arith.truncf %16 : vector<16x128xf32> to vector<16x128xbf16>
    %c0_12 = arith.constant 0 : index
    %c0_13 = arith.constant 0 : index
    %18 = vector.load %arg6[%c0_12, %c0_13] : memref<128x128xbf16, #tpu.memory_space<vmem>>, vector<128x128xbf16>
    %cst_14 = arith.constant dense<0.000000e+00> : vector<16x128xf32>
    %19 = tpu.matmul %17, %18, %cst_14 {dimension_numbers = #tpu.dot_dimension_numbers<[1], [0], [0], [1], [0, 0, 1, 1], [], []>} : vector<16x128xbf16>, vector<128x128xbf16>, vector<16x128xf32> -> vector<16x128xf32>
    %c0_15 = arith.constant 0 : index
    %c0_16 = arith.constant 0 : index
    %20 = vector.load %arg7[%c0_15, %c0_16] : memref<1x128xf32, #tpu.memory_space<vmem>>, vector<1x128xf32>
    %21 = vector.broadcast %20 : vector<1x128xf32> to vector<16x128xf32>
    %22 = arith.addf %19, %21 : vector<16x128xf32>
    %c0_17 = arith.constant 0 : index
    %c0_18 = arith.constant 0 : index
    %23 = vector.load %arg8[%c0_17, %c0_18] : memref<16x128xf32, #tpu.memory_space<vmem>>, vector<16x128xf32>
    tpu.vector_store %arg8[%c0_17, %c0_18], %22 {strides = array<i32>} : memref<16x128xf32, #tpu.memory_space<vmem>>, vector<16x128xf32>,
    return
  }
  func.func @transform_0(%arg0: i32) -> (i32, i32) {
    %c0_i32 = arith.constant 0 : i32
    %c0_i32_0 = arith.constant 0 : i32
    return %arg0, %c0_i32 : i32, i32
  }
  func.func @transform_1(%arg0: i32) -> (i32, i32) {
    %c0_i32 = arith.constant 0 : i32
    %c0_i32_0 = arith.constant 0 : i32
    %c0_i32_1 = arith.constant 0 : i32
    return %c0_i32, %c0_i32_0 : i32, i32
  }
  func.func @transform_2(%arg0: i32) -> (i32, i32) {
    %c0_i32 = arith.constant 0 : i32
    %c0_i32_0 = arith.constant 0 : i32
    %c0_i32_1 = arith.constant 0 : i32
    return %c0_i32, %c0_i32_0 : i32, i32
  }
  func.func @transform_3(%arg0: i32) -> (i32, i32) {
    %c0_i32 = arith.constant 0 : i32
    %c0_i32_0 = arith.constant 0 : i32
    %c0_i32_1 = arith.constant 0 : i32
    return %c0_i32, %c0_i32_0 : i32, i32
  }
  func.func @transform_4(%arg0: i32) -> (i32, i32) {
    %c0_i32 = arith.constant 0 : i32
    %c0_i32_0 = arith.constant 0 : i32
    %c0_i32_1 = arith.constant 0 : i32
    return %c0_i32, %c0_i32_0 : i32, i32
  }
  func.func @transform_5(%arg0: i32) -> (i32, i32) {
    %c0_i32 = arith.constant 0 : i32
    %c0_i32_0 = arith.constant 0 : i32
    %c0_i32_1 = arith.constant 0 : i32
    return %c0_i32, %c0_i32_0 : i32, i32
  }
  func.func @transform_6(%arg0: i32) -> (i32, i32) {
    %c0_i32 = arith.constant 0 : i32
    %c0_i32_0 = arith.constant 0 : i32
    %c0_i32_1 = arith.constant 0 : i32
    return %c0_i32, %c0_i32_0 : i32, i32
  }
  func.func @transform_7(%arg0: i32) -> (i32, i32) {
    %c0_i32 = arith.constant 0 : i32
    %c0_i32_0 = arith.constant 0 : i32
    return %arg0, %c0_i32 : i32, i32
  }
}

</mosaic_0001>

<bundles_post_ra>
// kernel: mlp_forward.1
= control target key start
LH: loop header
LB: loop body
LE: loop exit
PB: predicated region body
PF: predicated region fallthrough
CT: control target
= control target key end

     0   :  { %12 = vsyncpa [#allocation3], 0  ;;  %s1094_s24 = smov [#allocation2]   ;;  %s1268_s0 = inlined_call_operand.vmem [shape: f32[16,768], index: 0, kind: input, shape index: {}]   ;;  %s1269_s1 = inlined_call_operand.hbm [shape: bf16[768,128], index: 1, kind: input, shape index: {}]   ;;  %s1270_s2 = inlined_call_operand.vmem [shape: f32[1,128], index: 2, kind: input, shape index: {}]   ;;  %s1271_s3 = inlined_call_operand.vmem [shape: bf16[128,128], index: 3, kind: input, shape index: {}]   ;;  %s1272_s4 = inlined_call_operand.vmem [shape: f32[1,128], index: 4, kind: input, shape index: {}]   ;;  %s1273_s5 = inlined_call_operand.vmem [shape: bf16[128,128], index: 5, kind: input, shape index: {}]   ;;  %s1274_s6 = inlined_call_operand.vmem [shape: f32[1,128], index: 6, kind: input, shape index: {}]   ;;  %s1275_s7 = inlined_call_operand.vmem [shape: f32[16,128], index: 7, kind: output, shape index: {}]  }
   0x1   :  { %s20_s25 = sshll.u32 %s1094_s24, 4  ;;  %s1070_s28 = scalar_lea.hbm %s1269_s1, 6144  ;;  %s21_s25 = int_to_ptr.vmem [resolvable:$true] %s20_s25 }
   0x2   :  { %p1071_p0 = scmp.ne.s32.totalorder %s1269_s1, %s1070_s28  ;;  %p1074_p1 = scmp.lt.u32.totalorder %s1070_s28, %s1269_s1 }
   0x4   :  { %p1076_p2 = pnand %p1074_p1, %p1071_p0 }
   0x6   :  { %1079 = shalt.err (!%p1076_p2)
}
   0x7   :  { %s1080_s10 = scalar_lea.vmem %s21_s25, 6144  ;;  %p1085_p4 = scmp.lt.s32.totalorder %s21_s25, %s21_s25 }
   0x8   :  { %p1081_p3 = scmp.ne.s32.totalorder %s21_s25, %s1080_s10  ;;  %p1086_p5 = scmp.lt.s32.totalorder %s1080_s10, %s1080_s10 }
   0xa   :  { %p1087_p6 = por %p1086_p5, %p1085_p4 }
   0xc   :  { %p1088_p7 = pnand %p1087_p6, %p1081_p3 }
   0xe   :  { %1091 = shalt.err (!%p1088_p7)
}
   0xf   :  { %s1095_s11 = smov 64   ;;  %s1096_s12 = smov 4  }
  0x10   :  { %26 = dma.hbm_to_vmem [thread:$0]  %s1269_s1, 6144, %s21_s25, [#allocation3], %s1095_s11, %s1095_s11, %s1096_s12  }
  0x11   :  { %1092 = dma.done.wait [#allocation3], 6144  }
  0x12   :  { %1093 = vsyncadd [#allocation3], 4294961152  ;;  %v1006_v0 = vld [vmem:[#allocation2 + $0x40] sm:$0xff]   ;;  %v1010_v4 = vld [vmem:[#allocation2 + $0x48] sm:$0xff]   ;;  %vm1098_vm0 = vmmov 0  }
  0x13   :  { %v1007_v1 = vld [vmem:[#allocation2] sm:$0xff]   ;;  %877 = vmatprep.subr.bf16.mxu0 %v1006_v0  ;;  %v1011_v5 = vld [vmem:[#allocation2 + $0x8] sm:$0xff]   ;;  %v1014_v8 = vld [vmem:[#allocation2 + $0x50] sm:$0xff]  }
  0x14   :  { %v1008_v2 = vld [vmem:[#allocation2 + $0xc0] sm:$0xff]   ;;  %878 = vmatpush3.bf16.msra.mxu0 %v1007_v1  ;;  %v1012_v6 = vld [vmem:[#allocation2 + $0xc8] sm:$0xff]   ;;  %v1015_v9 = vld [vmem:[#allocation2 + $0x10] sm:$0xff]  }
  0x15   :  { %v1009_v3 = vld [vmem:[#allocation2 + $0x80] sm:$0xff]   ;;  %899 = vmatprep.subr.bf16.mxu1 %v1008_v2  ;;  %879 = vmatprep.subr.bf16.mxu0 %v1010_v4  ;;  %v1013_v7 = vld [vmem:[#allocation2 + $0x88] sm:$0xff]   ;;  %v1016_v10 = vld [vmem:[#allocation2 + $0xd0] sm:$0xff]  }
  0x16   :  { %900 = vmatpush3.bf16.msra.mxu1 %v1009_v3  ;;  %v1017_v11 = vld [vmem:[#allocation2 + $0x90] sm:$0xff]   ;;  %v1018_v12 = vld [vmem:[#allocation2 + $0x58] sm:$0xff]   ;;  %v1022_v16 = vld [vmem:[#allocation2 + $0x60] sm:$0xff]   ;;  %v1097_v3 = vmov 0.0  }
  0x17   :  { %901 = vmatprep.subr.bf16.mxu1 %v1012_v6  ;;  %v1019_v13 = vld [vmem:[#allocation2 + $0x18] sm:$0xff]   ;;  %v1023_v17 = vld [vmem:[#allocation2 + $0x20] sm:$0xff]   ;;  %v1026_v20 = vld [vmem:[#allocation2 + $0x68] sm:$0xff]  }
  0x18   :  { %880 = vmatpush3.bf16.msra.mxu0 %v1011_v5  ;;  %v1020_v14 = vld [vmem:[#allocation2 + $0xd8] sm:$0xff]   ;;  %v1024_v18 = vld [vmem:[#allocation2 + $0xe0] sm:$0xff]   ;;  %v1027_v21 = vld [vmem:[#allocation2 + $0x28] sm:$0xff]  }
  0x19   :  { %881 = vmatprep.subr.bf16.mxu0 %v1014_v8  ;;  %v1021_v15 = vld [vmem:[#allocation2 + $0x98] sm:$0xff]   ;;  %v1025_v19 = vld [vmem:[#allocation2 + $0xa0] sm:$0xff]   ;;  %v1028_v22 = vld [vmem:[#allocation2 + $0xe8] sm:$0xff]  }
  0x1a   :  { %902 = vmatpush3.bf16.msra.mxu1 %v1013_v7  ;;  %v1029_v23 = vld [vmem:[#allocation2 + $0xa8] sm:$0xff]   ;;  %v1030_v24 = vld [vmem:[#allocation2 + $0x70] sm:$0xff]   ;;  %v1034_v28 = vld [vmem:[#allocation2 + $0x78] sm:$0xff]  }
  0x1b   :  { %903 = vmatprep.subr.bf16.mxu1 %v1016_v10  ;;  %v1031_v25 = vld [vmem:[#allocation2 + $0x30] sm:$0xff]   ;;  %v1035_v29 = vld [vmem:[#allocation2 + $0x38] sm:$0xff]   ;;  %v42_v31 = vld [vmem:[%s1268_s0 + $0x8] sm:$0xff] }
  0x1c   :  { %882 = vmatpush3.bf16.msra.mxu0 %v1015_v9  ;;  %v1032_v26 = vld [vmem:[#allocation2 + $0xf0] sm:$0xff]   ;;  %v1036_v30 = vld [vmem:[#allocation2 + $0xf8] sm:$0xff]   ;;  %v41_v35 = vld [vmem:[%s1268_s0] sm:$0xff] }
  0x1d   :  { %883 = vmatprep.subr.bf16.mxu0 %v1018_v12  ;;  %v1033_v27 = vld [vmem:[#allocation2 + $0xb0] sm:$0xff]   ;;  %v48_v32 = vld [vmem:[%s1268_s0 + $0x38] sm:$0xff]  ;;  %v1038_v38 = vld [vmem:[#allocation2 + $0x140] sm:$0xff]  }
  0x1e   :  { %904 = vmatpush3.bf16.msra.mxu1 %v1017_v11  ;;  %v54_v33 = vpack.c.bf16 %v48_v32, %v42_v31  ;;  %v1037_v34 = vld [vmem:[#allocation2 + $0xb8] sm:$0xff]   ;;  %v47_v36 = vld [vmem:[%s1268_s0 + $0x30] sm:$0xff]  ;;  %v50_v40 = vld [vmem:[%s1268_s0 + $0x48] sm:$0xff] }
  0x1f   :  { %905 = vmatprep.subr.bf16.mxu1 %v1020_v14  ;;  %v53_v37 = vpack.c.bf16 %v47_v36, %v41_v35  ;;  %v44_v39 = vld [vmem:[%s1268_s0 + $0x18] sm:$0xff]  ;;  %v1039_v42 = vld [vmem:[#allocation2 + $0x100] sm:$0xff]   ;;  %v43_v43 = vld [vmem:[%s1268_s0 + $0x10] sm:$0xff] }
  0x20   :  { %884 = vmatpush3.bf16.msra.mxu0 %v1019_v13  ;;  %482 = vmatprep.mubr.bf16.mxu0 %v54_v33  ;;  %v56_v41 = vpack.c.bf16 %v50_v40, %v44_v39  ;;  %v49_v44 = vld [vmem:[%s1268_s0 + $0x40] sm:$0xff]  ;;  %v1040_v46 = vld [vmem:[#allocation2 + $0x148] sm:$0xff]   ;;  %v1042_v48 = vld [vmem:[#allocation2 + $0x150] sm:$0xff]  }
  0x21   :  { %885 = vmatprep.subr.bf16.mxu0 %v1022_v16  ;;  %v55_v45 = vpack.c.bf16 %v49_v44, %v43_v43  ;;  %v1041_v47 = vld [vmem:[#allocation2 + $0x108] sm:$0xff]   ;;  %v1043_v49 = vld [vmem:[#allocation2 + $0x110] sm:$0xff]   ;;  %v1044_v50 = vld [vmem:[#allocation2 + $0x158] sm:$0xff]  }
  0x22   :  { %906 = vmatpush3.bf16.msra.mxu1 %v1021_v15  ;;  %523 = vmatprep.mubr.bf16.mxu1 %v56_v41  ;;  %v1045_v51 = vld [vmem:[#allocation2 + $0x118] sm:$0xff]   ;;  %v1046_v52 = vld [vmem:[#allocation2 + $0x160] sm:$0xff]   ;;  %v1048_v54 = vld [vmem:[#allocation2 + $0x168] sm:$0xff]  }
  0x23   :  { %907 = vmatprep.subr.bf16.mxu1 %v1024_v18  ;;  %v1047_v53 = vld [vmem:[#allocation2 + $0x120] sm:$0xff]   ;;  %v46_v55 = vld [vmem:[%s1268_s0 + $0x28] sm:$0xff]  ;;  %v52_v57 = vld [vmem:[%s1268_s0 + $0x58] sm:$0xff] }
  0x24   :  { %886 = vmatpush3.bf16.msra.mxu0 %v1023_v17  ;;  %v1049_v56 = vld [vmem:[#allocation2 + $0x128] sm:$0xff]   ;;  %v1050_v58 = vld [vmem:[#allocation2 + $0x170] sm:$0xff]   ;;  %v58_v59 = vpack.c.bf16 %v52_v57, %v46_v55  ;;  %v1052_v61 = vld [vmem:[#allocation2 + $0x178] sm:$0xff]  }
  0x25   :  { %887 = vmatprep.subr.bf16.mxu0 %v1026_v20  ;;  %v1051_v60 = vld [vmem:[#allocation2 + $0x130] sm:$0xff]   ;;  %v1053_v62 = vld [vmem:[#allocation2 + $0x138] sm:$0xff]   ;;  %v45_v63 = vld [vmem:[%s1268_s0 + $0x20] sm:$0xff] }
  0x26   :  { %908 = vmatpush3.bf16.msra.mxu1 %v1025_v19  ;;  %v51_v0 = vld [vmem:[%s1268_s0 + $0x50] sm:$0xff]  ;;  %v1054_v2 = vld [vmem:[%s1271_s3] sm:$0xff]   ;;  %v1055_v4 = vld [vmem:[%s1271_s3 + $0x8] sm:$0xff]  }
  0x27   :  { %909 = vmatprep.subr.bf16.mxu1 %v1028_v22  ;;  %v57_v1 = vpack.c.bf16 %v51_v0, %v45_v63  ;;  %v1056_v5 = vld [vmem:[%s1271_s3 + $0x10] sm:$0xff]   ;;  %v1057_v6 = vld [vmem:[%s1271_s3 + $0x18] sm:$0xff]   ;;  %v1058_v7 = vld [vmem:[%s1271_s3 + $0x20] sm:$0xff]  }
  0x28   :  { %888 = vmatpush3.bf16.msra.mxu0 %v1027_v21  ;;  %v1059_v8 = vld [vmem:[%s1271_s3 + $0x28] sm:$0xff]   ;;  %v1060_v9 = vld [vmem:[%s1271_s3 + $0x30] sm:$0xff]   ;;  %v1061_v10 = vld [vmem:[%s1271_s3 + $0x38] sm:$0xff]  }
  0x29   :  { %889 = vmatprep.subr.bf16.mxu0 %v1030_v24  ;;  %v1062_v11 = vld [vmem:[%s1273_s5] sm:$0xff]   ;;  %v1063_v12 = vld [vmem:[%s1273_s5 + $0x8] sm:$0xff]   ;;  %v1064_v13 = vld [vmem:[%s1273_s5 + $0x10] sm:$0xff]  }
  0x2a   :  { %910 = vmatpush3.bf16.msra.mxu1 %v1029_v23  ;;  %v1065_v14 = vld [vmem:[%s1273_s5 + $0x18] sm:$0xff]   ;;  %v1066_v15 = vld [vmem:[%s1273_s5 + $0x20] sm:$0xff]   ;;  %v1067_v16 = vld [vmem:[%s1273_s5 + $0x28] sm:$0xff]  }
  0x2b   :  { %911 = vmatprep.subr.bf16.mxu1 %v1032_v26  ;;  %v810_v18 = vld [vmem:[%s1270_s2] ss:$0 sm:$0xff] }
  0x2c   :  { %890 = vmatpush3.bf16.msra.mxu0 %v1031_v25  ;;  %v868_v57 = vld [vmem:[%s1274_s6] ss:$0 sm:$0xff] }
  0x2d   :  { %891 = vmatprep.subr.bf16.mxu0 %v1034_v28 }
  0x2e   :  { %912 = vmatpush3.bf16.msra.mxu1 %v1033_v27 }
  0x2f   :  { %913 = vmatprep.subr.bf16.mxu1 %v1036_v30 }
  0x30   :  { %892 = vmatpush3.bf16.msra.mxu0 %v1035_v29 }
  0x31   :  { %921 = vmatprep.subr.bf16.mxu0 %v1038_v38 }
  0x32   :  { %914 = vmatpush3.bf16.msra.mxu1 %v1037_v34 }
  0x33   :  { %483 = vmatmul.mubr.bf16.vlgmr.msra.gmra.mrb[0].mxu0 %v53_v37  ;;  %961 = vmatprep.subr.bf16.mxu1 %v1097_v3 }
  0x34   :  { %922 = vmatpush3.bf16.msra.mxu0 %v1039_v42  ;;  %564 = vmatprep.mubr.bf16.mxu0 %v58_v59 }
  0x35   :  { %524 = vmatmul.mubr.bf16.vlgmr.msra.gmra.mrb[0].mxu1 %v55_v45  ;;  %923 = vmatprep.subr.bf16.mxu0 %v1040_v46  ;;  %v1068_v45 = vld [vmem:[%s1273_s5 + $0x30] sm:$0xff]   ;;  %v1069_v46 = vld [vmem:[%s1273_s5 + $0x38] sm:$0xff]  }
  0x36   :  { %962 = vmatpush3.bf16.msra.mxu1 %v1054_v2  ;;  %977 = vmatprep.mubr.msk.bf16.mxu1 %vm1098_vm0, %v1097_v3 }
  0x37   :  { %963 = vmatprep.subr.bf16.mxu1 %v1097_v3 }
  0x38   :  { %924 = vmatpush3.bf16.msra.mxu0 %v1041_v47  ;;  %v859_v47 = vld [vmem:[%s1272_s4] ss:$0 sm:$0xff] }
  0x39   :  { %925 = vmatprep.subr.bf16.mxu0 %v1042_v48 }
  0x3a   :  { %964 = vmatpush3.bf16.msra.mxu1 %v1055_v4 }
  0x3b   :  { %965 = vmatprep.subr.bf16.mxu1 %v1097_v3 }
  0x3c   :  { %926 = vmatpush3.bf16.msra.mxu0 %v1043_v49 }
  0x3d   :  { %927 = vmatprep.subr.bf16.mxu0 %v1044_v50 }
  0x3e   :  { %966 = vmatpush3.bf16.msra.mxu1 %v1056_v5 }
  0x3f   :  { %967 = vmatprep.subr.bf16.mxu1 %v1097_v3 }
  0x40   :  { %928 = vmatpush3.bf16.msra.mxu0 %v1045_v51 }
  0x41   :  { %929 = vmatprep.subr.bf16.mxu0 %v1046_v52 }
  0x42   :  { %968 = vmatpush3.bf16.msra.mxu1 %v1057_v6 }
  0x43   :  { %969 = vmatprep.subr.bf16.mxu1 %v1097_v3 }
  0x44   :  { %930 = vmatpush3.bf16.msra.mxu0 %v1047_v53 }
  0x45   :  { %931 = vmatprep.subr.bf16.mxu0 %v1048_v54 }
  0x46   :  { %970 = vmatpush3.bf16.msra.mxu1 %v1058_v7 }
  0x47   :  { %971 = vmatprep.subr.bf16.mxu1 %v1097_v3 }
  0x48   :  { %932 = vmatpush3.bf16.msra.mxu0 %v1049_v56 }
  0x49   :  { %933 = vmatprep.subr.bf16.mxu0 %v1050_v58 }
  0x4a   :  { %972 = vmatpush3.bf16.msra.mxu1 %v1059_v8 }
  0x4b   :  { %973 = vmatprep.subr.bf16.mxu1 %v1097_v3 }
  0x4c   :  { %934 = vmatpush3.bf16.msra.mxu0 %v1051_v60 }
  0x4d   :  { %935 = vmatprep.subr.bf16.mxu0 %v1052_v61 }
  0x4e   :  { %974 = vmatpush3.bf16.msra.mxu1 %v1060_v9 }
  0x4f   :  { %975 = vmatprep.subr.bf16.mxu1 %v1097_v3 }
  0x50   :  { %936 = vmatpush3.bf16.msra.mxu0 %v1053_v62 }
  0x51   :  { %981 = vmatprep.subr.bf16.mxu0 %v1097_v3 }
  0x52   :  { %976 = vmatpush3.bf16.msra.mxu1 %v1061_v10 }
  0x53   :  { %565 = vmatmul.mubr.bf16.vlgmr.msra.gmra.mrb[4].mxu0 %v57_v1 }
  0x54   :  { %997 = vmatprep.mubr.msk.bf16.mxu0 %vm1098_vm0, %v1097_v3  ;;  %982 = vmatpush3.bf16.msra.mxu0 %v1062_v11 }
  0x55   :  { %983 = vmatprep.subr.bf16.mxu0 %v1097_v3 }
  0x58   :  { %984 = vmatpush3.bf16.msra.mxu0 %v1063_v12 }
  0x59   :  { %985 = vmatprep.subr.bf16.mxu0 %v1097_v3 }
  0x5c   :  { %986 = vmatpush3.bf16.msra.mxu0 %v1064_v13 }
  0x5d   :  { %987 = vmatprep.subr.bf16.mxu0 %v1097_v3 }
  0x60   :  { %988 = vmatpush3.bf16.msra.mxu0 %v1065_v14 }
  0x61   :  { %989 = vmatprep.subr.bf16.mxu0 %v1097_v3 }
  0x64   :  { %990 = vmatpush3.bf16.msra.mxu0 %v1066_v15 }
  0x65   :  { %991 = vmatprep.subr.bf16.mxu0 %v1097_v3 }
  0x68   :  { %992 = vmatpush3.bf16.msra.mxu0 %v1067_v16 }
  0x69   :  { %993 = vmatprep.subr.bf16.mxu0 %v1097_v3 }
  0x6c   :  { %994 = vmatpush3.bf16.msra.mxu0 %v1068_v45 }
  0x6d   :  { %995 = vmatprep.subr.bf16.mxu0 %v1097_v3 }
  0x70   :  { %996 = vmatpush3.bf16.msra.mxu0 %v1069_v46 }
 0x106   :  { %v893_v17 = vpop.f32.mrb[0].mxu0 }
 0x107   :  { %v894_v19 = vpop.f32.mrb[1].mxu0 }
 0x108   :  { %v895_v20 = vadd.f32 %v894_v19, %v893_v17  ;;  %v896_v21 = vpop.f32.mrb[2].mxu0  ;;  %v915_v22 = vpop.f32.mrb[0].mxu1 }
 0x109   :  { %v897_v23 = vpop.f32.mrb[3].mxu0  ;;  %v916_v26 = vpop.f32.mrb[1].mxu1 }
 0x10a   :  { %v485_v24 = vadd.f32 %v895_v20, %v810_v18  ;;  %v898_v25 = vadd.f32 %v897_v23, %v896_v21  ;;  %v917_v27 = vadd.f32 %v916_v26, %v915_v22  ;;  %v918_v28 = vpop.f32.mrb[2].mxu1 }
 0x10b   :  { %v919_v30 = vpop.f32.mrb[3].mxu1 }
 0x10c   :  { %v488_v29 = vadd.f32 %v898_v25, %v810_v18  ;;  %v526_v31 = vadd.f32 %v917_v27, %v485_v24  ;;  %v920_v32 = vadd.f32 %v919_v30, %v918_v28 }
 0x10e   :  { %v529_v33 = vadd.f32 %v920_v32, %v488_v29 }
 0x126   :  { %v937_v34 = vpop.f32.mrb[4].mxu0 }
 0x127   :  { %v938_v35 = vpop.f32.mrb[5].mxu0 }
 0x128   :  { %v939_v36 = vadd.f32 %v938_v35, %v937_v34  ;;  %v940_v37 = vpop.f32.mrb[6].mxu0 }
 0x129   :  { %v941_v38 = vpop.f32.mrb[7].mxu0 }
 0x12a   :  { %v567_v39 = vadd.f32 %v939_v36, %v526_v31  ;;  %v942_v40 = vadd.f32 %v941_v38, %v940_v37 }
 0x12c   :  { %v570_v41 = vadd.f32 %v942_v40, %v529_v33  ;;  %v573_v42 = vmax.f32 %v567_v39, 0.0 }
 0x12e   :  { %v574_v43 = vmax.f32 %v570_v41, 0.0 }
 0x130   :  { %v575_v44 = vpack.c.bf16 %v574_v43, %v573_v42 }
 0x132   :  { %978 = vmatmul.mubr.bf16.vlgmr.msra.gmra.mrb[4].mxu1 %v575_v44 }
 0x205   :  { %v681_v48 = vpop.f32.mrb[4].mxu1 }
 0x206   :  { %v682_v49 = vadd.f32 %v859_v47, %v681_v48  ;;  %v979_v50 = vpop.f32.mrb[5].mxu1 }
 0x207   :  { %v684_v51 = vpop.f32.mrb[6].mxu1 }
 0x208   :  { %v685_v52 = vadd.f32 %v859_v47, %v684_v51  ;;  %v980_v53 = vpop.f32.mrb[7].mxu1  ;;  %v688_v54 = vmax.f32 %v682_v49, 0.0 }
 0x20a   :  { %v689_v55 = vmax.f32 %v685_v52, 0.0 }
 0x20c   :  { %v690_v56 = vpack.c.bf16 %v689_v55, %v688_v54 }
 0x20e   :  { %998 = vmatmul.mubr.bf16.vlgmr.msra.gmra.mrb[8].mxu0 %v690_v56 }
 0x2e1   :  { %v796_v58 = vpop.f32.mrb[8].mxu0 }
 0x2e2   :  { %v797_v59 = vadd.f32 %v868_v57, %v796_v58  ;;  %v999_v60 = vpop.f32.mrb[9].mxu0 }
 0x2e3   :  { %v799_v61 = vpop.f32.mrb[10].mxu0 }
 0x2e4   :  { %803 = vst [vmem:[%s1275_s7] sm:$0xff] %v797_v59  ;;  %v800_v62 = vadd.f32 %v868_v57, %v799_v61  ;;  %v1000_v63 = vpop.f32.mrb[11].mxu0 }
 0x2e6   :  { %804 = vst [vmem:[%s1275_s7 + $0x8] sm:$0xff] %v800_v62 }
 0x2e7   :  { %809 = vsyncpa [#allocation3], 1 }

</bundles_post_ra>
